<compile_context>
chip_gen: v5e
topology: v5e:2x2
jax: 0.10.0
libtpu: 0.0.40
codegen_flags: <defaults>
</compile_context>

<pallas_src>
import jax
import jax.numpy as jnp
from jax.experimental import pallas as pl
from jax.experimental.pallas import tpu as pltpu


def _round_up(x, m):
    return (x + m - 1) // m * m


def fnn_kernel(x_ref, w1_ref, b1_ref, w2_ref, b2_ref, w3r_ref, b3_ref, o_ref):
    # In-kernel bf16 cast of the streamed f32 activations (VPU, under MXU slack).
    x = x_ref[...].astype(jnp.bfloat16)

    # Layer 1: (TB, F) @ (F, 128) on the MXU, f32 accumulate; bias + ReLU on VPU.
    h = jnp.dot(x, w1_ref[...], preferred_element_type=jnp.float32)
    h = jnp.maximum(h + b1_ref[...], 0.0)

    # Layer 2: (TB, 128) @ (128, 1024) on the MXU.
    h = jnp.dot(h.astype(jnp.bfloat16), w2_ref[...],
                preferred_element_type=jnp.float32)
    h = jnp.maximum(h + b2_ref[...], 0.0)

    # Layer 3 (out_features = 1): lane reduce against the w3 row (VPU/XLU are
    # free filler under the MXU), emitted lane-dense as a (1, TB) row.
    out = jnp.sum(h * w3r_ref[...], axis=-1).reshape(1, -1) + b3_ref[...]
    o_ref[...] = out.astype(o_ref.dtype)


def fnn_forward(x, params, *, tile_b=1024):
    """x: [B, 2*input_size] float32; params: [(W1,b1),(W2,b2),(W3,b3)], W is [in,out]."""
    (w1, b1), (w2, b2), (w3, b3) = params
    B, F = x.shape
    H1 = w1.shape[1]            # 64
    H2 = w2.shape[1]            # 1000
    H1P = _round_up(H1, 128)    # 128: dense lanes for h1, K=128 for layer 2
    H2P = _round_up(H2, 128)    # 1024: dense lanes for h2 and the w3 reduce

    # ---- batch tiling -------------------------------------------------------
    tile_b = max(16, _round_up(int(tile_b), 16))      # sublane-packing friendly
    tile_b = min(tile_b, _round_up(B, 16))
    # v7x megacore: keep >= 2 grid steps when halving still yields a clean tile.
    if _round_up(B, tile_b) // tile_b == 1 and tile_b >= 32 and tile_b % 32 == 0:
        tile_b //= 2
    B_pad = _round_up(B, tile_b)
    n_tiles = B_pad // tile_b
    if B_pad != B:
        x = jnp.pad(x, ((0, B_pad - B), (0, 0)))       # padded rows sliced off later
    x = x.astype(jnp.float32)                          # stream f32; cast in-kernel

    # ---- parameter prep (zero padding is exact through ReLU / the w3 reduce) -
    f32, bf16 = jnp.float32, jnp.bfloat16
    w1p = jnp.zeros((F, H1P), f32).at[:, :H1].set(w1.astype(f32)).astype(bf16)
    b1p = jnp.zeros((1, H1P), f32).at[:, :H1].set(b1.reshape(1, H1).astype(f32))
    w2p = jnp.zeros((H1P, H2P), f32).at[:H1, :H2].set(w2.astype(f32)).astype(bf16)
    b2p = jnp.zeros((1, H2P), f32).at[:, :H2].set(b2.reshape(1, H2).astype(f32))
    w3p = jnp.zeros((1, H2P), f32).at[:, :H2].set(w3.reshape(1, H2).astype(f32))
    b3p = b3.reshape(1, 1).astype(f32)

    # Weights/biases: full-array blocks, constant index_map -> VMEM-resident.
    def resident(a):
        return pl.BlockSpec(a.shape, lambda i: (0, 0))

    # ---- VMEM budget: v7x has 64 MiB physical -> keep scoped limit <= 48 MiB --
    weights_bytes = sum(int(a.size) * a.dtype.itemsize
                        for a in (w1p, b1p, w2p, b2p, w3p, b3p))
    stream_bytes = 2 * (tile_b * F * 4) + 2 * (tile_b * 4)    # dbl-buffered x / out row
    act_bytes = 4 * tile_b * H2P * 4 + 4 * tile_b * H1P * 4   # in-kernel temporaries
    est = weights_bytes + stream_bytes + act_bytes + (8 << 20)
    vmem_limit = int(min(max(est, 32 << 20), 48 << 20))

    out_rows = pl.pallas_call(
        fnn_kernel,
        out_shape=jax.ShapeDtypeStruct((n_tiles, tile_b), jnp.float32),
        grid=(n_tiles,),
        in_specs=[
            pl.BlockSpec((tile_b, F), lambda i: (i, 0)),       # streamed activations
            resident(w1p), resident(b1p),
            resident(w2p), resident(b2p),
            resident(w3p), resident(b3p),
        ],
        out_specs=pl.BlockSpec((1, tile_b), lambda i: (i, 0)),  # lane-dense output row
        compiler_params=pltpu.CompilerParams(
            dimension_semantics=("parallel",),
            vmem_limit_bytes=vmem_limit,
        ),
    )(x, w1p, b1p, w2p, b2p, w3p, b3p)

    # (n_tiles, tile_b) row-major == batch order; map back to (B, 1).
    return out_rows.reshape(B_pad, 1)[:B]


def init_params(key, input_size):
    """nn.Linear default init: U(-1/sqrt(fan_in), +1/sqrt(fan_in)) for W and b."""
    dims = [(input_size * 2, 64), (64, 1000), (1000, 1)]
    params = []
    for fan_in, fan_out in dims:
        key, kw, kb = jax.random.split(key, 3)
        bound = 1.0 / (fan_in ** 0.5)
        w = jax.random.uniform(kw, (fan_in, fan_out), jnp.float32, -bound, bound)
        b = jax.random.uniform(kb, (1, fan_out), jnp.float32, -bound, bound)
        params.append((w, b))
    return params


def reference_forward(x, params):
    """Pure-JAX reference with the same precision recipe as the kernel."""
    (w1, b1), (w2, b2), (w3, b3) = params
    h = jnp.dot(x.astype(jnp.bfloat16), w1.astype(jnp.bfloat16),
                preferred_element_type=jnp.float32) + b1.reshape(1, -1)
    h = jnp.maximum(h, 0.0)
    h = jnp.dot(h.astype(jnp.bfloat16), w2.astype(jnp.bfloat16),
                preferred_element_type=jnp.float32) + b2.reshape(1, -1)
    h = jnp.maximum(h, 0.0)
    out = jnp.sum(h * w3.reshape(1, -1).astype(jnp.float32),
                  axis=-1, keepdims=True) + b3.reshape(1, 1)
    return out


if __name__ == "__main__":
    key = jax.random.PRNGKey(0)
    input_size = 16          # first layer expects 2*input_size = 32 features
    batch = 8

    kx, kp = jax.random.split(key)
    x = jax.random.normal(kx, (batch, input_size * 2), jnp.float32)
    params = init_params(kp, input_size)

    out = jax.block_until_ready(fnn_forward(x, params))
    ref = reference_forward(x, params)

    assert out.shape == (batch, 1)
    assert jnp.allclose(out, ref, atol=2e-3, rtol=2e-3), "mismatch vs pure-JAX reference"

    print("KERNEL_OK")
</pallas_src>

<mosaic_0001>
module attributes {stable_mosaic.version = 11 : i64} {
  func.func @fnn_kernel(%arg0: i32, %arg1: memref<16x32xf32, #tpu.memory_space<vmem>>, %arg2: memref<32x128xbf16, #tpu.memory_space<vmem>>, %arg3: memref<1x128xf32, #tpu.memory_space<vmem>>, %arg4: memref<128x1024xbf16, #tpu.memory_space<vmem>>, %arg5: memref<1x1024xf32, #tpu.memory_space<vmem>>, %arg6: memref<1x1024xf32, #tpu.memory_space<vmem>>, %arg7: memref<1x1xf32, #tpu.memory_space<vmem>>, %arg8: memref<1x16xf32, #tpu.memory_space<vmem>>) attributes {dimension_semantics = [#tpu.dimension_semantics<parallel>], iteration_bounds = array<i64: 1>, scalar_prefetch = 0 : i64, scratch_operands = 0 : i64, tpu.core_type = #tpu.core_type<tc>, window_params = [{transform_indices = @transform_0, window_bounds = array<i64: 16, 32>}, {pipeline_mode = #tpu.pipeline_mode<synchronous>, transform_indices = @transform_1, window_bounds = array<i64: 32, 128>}, {pipeline_mode = #tpu.pipeline_mode<synchronous>, transform_indices = @transform_2, window_bounds = array<i64: 1, 128>}, {pipeline_mode = #tpu.pipeline_mode<synchronous>, transform_indices = @transform_3, window_bounds = array<i64: 128, 1024>}, {pipeline_mode = #tpu.pipeline_mode<synchronous>, transform_indices = @transform_4, window_bounds = array<i64: 1, 1024>}, {pipeline_mode = #tpu.pipeline_mode<synchronous>, transform_indices = @transform_5, window_bounds = array<i64: 1, 1024>}, {pipeline_mode = #tpu.pipeline_mode<synchronous>, transform_indices = @transform_6, window_bounds = array<i64: 1, 1>}, {transform_indices = @transform_7, window_bounds = array<i64: 1, 16>}]} {
    %c0 = arith.constant 0 : index
    %c0_0 = arith.constant 0 : index
    %0 = vector.load %arg1[%c0, %c0_0] : memref<16x32xf32, #tpu.memory_space<vmem>>, vector<16x32xf32>
    %1 = arith.truncf %0 : vector<16x32xf32> to vector<16x32xbf16>
    %c0_1 = arith.constant 0 : index
    %c0_2 = arith.constant 0 : index
    %2 = vector.load %arg2[%c0_1, %c0_2] : memref<32x128xbf16, #tpu.memory_space<vmem>>, vector<32x128xbf16>
    %cst = arith.constant dense<0.000000e+00> : vector<16x128xf32>
    %3 = tpu.matmul %1, %2, %cst {dimension_numbers = #tpu.dot_dimension_numbers<[1], [0], [0], [1], [0, 0, 1, 1], [], []>} : vector<16x32xbf16>, vector<32x128xbf16>, vector<16x128xf32> -> vector<16x128xf32>
    %c0_3 = arith.constant 0 : index
    %c0_4 = arith.constant 0 : index
    %4 = vector.load %arg3[%c0_3, %c0_4] : memref<1x128xf32, #tpu.memory_space<vmem>>, vector<1x128xf32>
    %5 = vector.broadcast %4 : vector<1x128xf32> to vector<16x128xf32>
    %6 = arith.addf %3, %5 : vector<16x128xf32>
    %cst_5 = arith.constant 0.000000e+00 : f32
    %7 = vector.broadcast %cst_5 : f32 to vector<16x128xf32>
    %8 = arith.maximumf %6, %7 : vector<16x128xf32>
    %9 = arith.truncf %8 : vector<16x128xf32> to vector<16x128xbf16>
    %c0_6 = arith.constant 0 : index
    %c0_7 = arith.constant 0 : index
    %10 = vector.load %arg4[%c0_6, %c0_7] : memref<128x1024xbf16, #tpu.memory_space<vmem>>, vector<128x1024xbf16>
    %cst_8 = arith.constant dense<0.000000e+00> : vector<16x1024xf32>
    %11 = tpu.matmul %9, %10, %cst_8 {dimension_numbers = #tpu.dot_dimension_numbers<[1], [0], [0], [1], [0, 0, 1, 1], [], []>} : vector<16x128xbf16>, vector<128x1024xbf16>, vector<16x1024xf32> -> vector<16x1024xf32>
    %c0_9 = arith.constant 0 : index
    %c0_10 = arith.constant 0 : index
    %12 = vector.load %arg5[%c0_9, %c0_10] : memref<1x1024xf32, #tpu.memory_space<vmem>>, vector<1x1024xf32>
    %13 = vector.broadcast %12 : vector<1x1024xf32> to vector<16x1024xf32>
    %14 = arith.addf %11, %13 : vector<16x1024xf32>
    %cst_11 = arith.constant 0.000000e+00 : f32
    %15 = vector.broadcast %cst_11 : f32 to vector<16x1024xf32>
    %16 = arith.maximumf %14, %15 : vector<16x1024xf32>
    %c0_12 = arith.constant 0 : index
    %c0_13 = arith.constant 0 : index
    %17 = vector.load %arg6[%c0_12, %c0_13] : memref<1x1024xf32, #tpu.memory_space<vmem>>, vector<1x1024xf32>
    %18 = vector.broadcast %17 : vector<1x1024xf32> to vector<16x1024xf32>
    %19 = arith.mulf %16, %18 : vector<16x1024xf32>
    %cst_14 = arith.constant dense<0.000000e+00> : vector<16xf32>
    %20 = vector.multi_reduction <add>, %19, %cst_14 [1] : vector<16x1024xf32> to vector<16xf32>
    %21 = vector.shape_cast %20 : vector<16xf32> to vector<1x16xf32>
    %c0_15 = arith.constant 0 : index
    %c0_16 = arith.constant 0 : index
    %22 = vector.load %arg7[%c0_15, %c0_16] : memref<1x1xf32, #tpu.memory_space<vmem>>, vector<1x1xf32>
    %23 = vector.broadcast %22 : vector<1x1xf32> to vector<1x16xf32>
    %24 = arith.addf %21, %23 : vector<1x16xf32>
    %c0_17 = arith.constant 0 : index
    %c0_18 = arith.constant 0 : index
    %25 = vector.load %arg8[%c0_17, %c0_18] : memref<1x16xf32, #tpu.memory_space<vmem>>, vector<1x16xf32>
    tpu.vector_store %arg8[%c0_17, %c0_18], %24 {strides = array<i32>} : memref<1x16xf32, #tpu.memory_space<vmem>>, vector<1x16xf32>,
    return
  }
  func.func @transform_0(%arg0: i32) -> (i32, i32) {
    %c0_i32 = arith.constant 0 : i32
    %c0_i32_0 = arith.constant 0 : i32
    return %arg0, %c0_i32 : i32, i32
  }
  func.func @transform_1(%arg0: i32) -> (i32, i32) {
    %c0_i32 = arith.constant 0 : i32
    %c0_i32_0 = arith.constant 0 : i32
    %c0_i32_1 = arith.constant 0 : i32
    return %c0_i32, %c0_i32_0 : i32, i32
  }
  func.func @transform_2(%arg0: i32) -> (i32, i32) {
    %c0_i32 = arith.constant 0 : i32
    %c0_i32_0 = arith.constant 0 : i32
    %c0_i32_1 = arith.constant 0 : i32
    return %c0_i32, %c0_i32_0 : i32, i32
  }
  func.func @transform_3(%arg0: i32) -> (i32, i32) {
    %c0_i32 = arith.constant 0 : i32
    %c0_i32_0 = arith.constant 0 : i32
    %c0_i32_1 = arith.constant 0 : i32
    return %c0_i32, %c0_i32_0 : i32, i32
  }
  func.func @transform_4(%arg0: i32) -> (i32, i32) {
    %c0_i32 = arith.constant 0 : i32
    %c0_i32_0 = arith.constant 0 : i32
    %c0_i32_1 = arith.constant 0 : i32
    return %c0_i32, %c0_i32_0 : i32, i32
  }
  func.func @transform_5(%arg0: i32) -> (i32, i32) {
    %c0_i32 = arith.constant 0 : i32
    %c0_i32_0 = arith.constant 0 : i32
    %c0_i32_1 = arith.constant 0 : i32
    return %c0_i32, %c0_i32_0 : i32, i32
  }
  func.func @transform_6(%arg0: i32) -> (i32, i32) {
    %c0_i32 = arith.constant 0 : i32
    %c0_i32_0 = arith.constant 0 : i32
    %c0_i32_1 = arith.constant 0 : i32
    return %c0_i32, %c0_i32_0 : i32, i32
  }
  func.func @transform_7(%arg0: i32) -> (i32, i32) {
    %c0_i32 = arith.constant 0 : i32
    %c0_i32_0 = arith.constant 0 : i32
    return %arg0, %c0_i32 : i32, i32
  }
}

</mosaic_0001>

<bundles_post_ra>
// kernel: tpu_custom_call.1
= control target key start
LH: loop header
LB: loop body
LE: loop exit
PB: predicated region body
PF: predicated region fallthrough
CT: control target
= control target key end

     0   :  { %s1366_s0 = inlined_call_operand.hbm [shape: f32[16,32], index: 0, kind: input, shape index: {}]   ;;  %s1367_s1 = inlined_call_operand.hbm [shape: bf16[32,128], index: 1, kind: input, shape index: {}]   ;;  %s1368_s2 = inlined_call_operand.vmem [shape: f32[1,128], index: 2, kind: input, shape index: {}]   ;;  %s1369_s3 = inlined_call_operand.hbm [shape: bf16[128,1024], index: 3, kind: input, shape index: {}]   ;;  %s1370_s4 = inlined_call_operand.hbm [shape: f32[1,1024], index: 4, kind: input, shape index: {}]   ;;  %s1371_s5 = inlined_call_operand.hbm [shape: f32[1,1024], index: 5, kind: input, shape index: {}]   ;;  %s1372_s6 = inlined_call_operand.<no memory space> [shape: f32[1,1], index: 6, kind: input, shape index: {}]   ;;  %s1373_s7 = inlined_call_operand.hbm [shape: f32[1,16], index: 7, kind: output, shape index: {}]  }
   0x1   :  { %v12_v0 = vstv %s1372_s6 }
   0x2   :  { %13 = vst [vmem:[#allocation2] sm:$0x1] %v12_v0 }
   0x3   :  { %14 = vsyncpa [#allocation4], 0 }
   0x4   :  { %15 = vsyncpa [#allocation7], 0 }
   0x5   :  { %16 = vsyncpa [#allocation10], 0  ;;  %s35_s28 = sshll.u32 %s1367_s1, 4  ;;  %s36_s28 = int_to_ptr.hbm [resolvable:$true] %s35_s28 }
   0x6   :  { %17 = vsyncpa [#allocation5], 0  ;;  %s1268_s29 = smov [#allocation6]   ;;  %s64_s10 = sshll.u32 %s1370_s4, 4  ;;  %s65_s10 = int_to_ptr.hbm [resolvable:$true] %s64_s10 }
   0x7   :  { %s37_s30 = sshll.u32 %s1268_s29, 4  ;;  %s1269_s11 = smov 64   ;;  %s38_s30 = int_to_ptr.vmem [resolvable:$true] %s37_s30 }
   0x8   :  { %s1270_s12 = smov 4   ;;  %s1271_s6 = smov [#allocation9]  }
   0x9   :  { %43 = dma.hbm_to_vmem [thread:$0]  %s36_s28, 256, %s38_s30, [#allocation7], %s1269_s11, %s1269_s11, %s1270_s12  }
   0xa   :  { %s66_s13 = sshll.u32 %s1271_s6, 4  ;;  %s22_s16 = sshll.u32 %s1366_s0, 4  ;;  %s67_s13 = int_to_ptr.vmem [resolvable:$true] %s66_s13  ;;  %s23_s16 = int_to_ptr.hbm [resolvable:$true] %s22_s16 }
   0xb   :  { %69 = dma.hbm_to_vmem [thread:$0]  %s65_s10, 128, %s67_s13, [#allocation10]  }
   0xc   :  { %s1272_s1 = smov [#allocation3]   ;;  %s50_s4 = sshll.u32 %s1369_s3, 4  ;;  %s51_s4 = int_to_ptr.hbm [resolvable:$true] %s50_s4 }
   0xd   :  { %s24_s17 = sshll.u32 %s1272_s1, 4  ;;  %s1273_s20 = smov 128   ;;  %s25_s17 = int_to_ptr.vmem [resolvable:$true] %s24_s17 }
   0xe   :  { %s1274_s21 = smov 8   ;;  %s1275_s22 = smov [#allocation8]  }
   0xf   :  { %30 = dma.hbm_to_vmem [thread:$0]  %s23_s16, 256, %s25_s17, [#allocation4], %s1273_s20, %s1273_s20, %s1274_s21  }
  0x10   :  { %s52_s23 = sshll.u32 %s1275_s22, 4  ;;  %s1276_s24 = smov 512   ;;  %s53_s23 = int_to_ptr.vmem [resolvable:$true] %s52_s23 }
  0x11   :  { %s1277_s25 = smov 32   ;;  %s75_s27 = sshll.u32 %s1371_s5, 4  ;;  %s76_s27 = int_to_ptr.hbm [resolvable:$true] %s75_s27 }
  0x12   :  { %58 = dma.hbm_to_vmem [thread:$0]  %s51_s4, 8192, %s53_s23, [#allocation7], %s1276_s24, %s1276_s24, %s1277_s25  }
  0x13   :  { %s1278_s28 = smov [#allocation11]  }
  0x14   :  { %s77_s29 = sshll.u32 %s1278_s28, 4  ;;  %s78_s29 = int_to_ptr.vmem [resolvable:$true] %s77_s29 }
  0x15   :  { %80 = dma.hbm_to_vmem [thread:$0]  %s76_s27, 128, %s78_s29, [#allocation10]  }
  0x16   :  { %1260 = dma.done.wait [#allocation4], 256  }
  0x17   :  { %1261 = vsyncadd [#allocation4], 4294967040 }
  0x18   :  { %1262 = dma.done.wait [#allocation7], 8448  }
  0x19   :  { %1263 = vsyncadd [#allocation7], 4294958848 }
  0x1a   :  { %1264 = dma.done.wait [#allocation10], 256  }
  0x1b   :  { %1265 = vsyncadd [#allocation10], 4294967040  ;;  %v1036_v1 = vld [vmem:[#allocation6 + $0x8] sm:$0xff]  ;;  %v1035_v2 = vld [vmem:[#allocation6] sm:$0xff]  ;;  %vm127_vm0 = vcmask 261120   ;;  %s758_s10 = sshll.u32 %s1373_s7, 4  ;;  %s759_s10 = int_to_ptr.hbm [resolvable:$true] %s758_s10 }
  0x1c   :  { %v104_v3 = vld [vmem:[#allocation3] sm:$0xff]  ;;  %v105_v4 = vld [vmem:[#allocation3 + $0x8] sm:$0xff]  ;;  %137 = vmatpush.bf16.msra.mxu0 %v1036_v1  ;;  %vm746_vm1 = vcmask 130112   ;;  %vm749_vm2 = vcmask 122880  }
  0x1d   :  { %v1005_v5 = vld [vmem:[#allocation8 + $0x1c0] sm:$0xf]  ;;  %v1093_v8 = vld [vmem:[#allocation8 + $0x1c4] sm:$0xf]  ;;  %v1013_v10 = vld [vmem:[#allocation8 + $0x1c8] sm:$0xf]  ;;  %v106_v20 = vpack.c.bf16 %v105_v4, %v104_v3 }
  0x1e   :  { %v1097_v6 = vld [vmem:[#allocation8 + $0x1dc] sm:$0xf0]  ;;  %v1007_v9 = vld [vmem:[#allocation8 + $0x1e0] sm:$0xf0]  ;;  %v1098_v12 = vld [vmem:[#allocation8 + $0x1e4] sm:$0xf0] }
  0x1f   :  { %v1006_v7 = vor.u32 %v1097_v6, %v1005_v5  ;;  %v1010_v11 = vor.u32 %v1093_v8, %v1007_v9  ;;  %v1094_v13 = vld [vmem:[#allocation8 + $0x1cc] sm:$0xf]  ;;  %v1014_v15 = vor.u32 %v1098_v12, %v1013_v10  ;;  %v973_v17 = vld [vmem:[#allocation8 + $0x180] sm:$0xf]  ;;  %v1085_v19 = vld [vmem:[#allocation8 + $0x184] sm:$0xf] }
  0x20   :  { %v1015_v14 = vld [vmem:[#allocation8 + $0x1e8] sm:$0xf0]  ;;  %v1089_v18 = vld [vmem:[#allocation8 + $0x19c] sm:$0xf0]  ;;  %v975_v22 = vld [vmem:[#allocation8 + $0x1a0] sm:$0xf0]  ;;  %138 = vmatpush.bf16.msra.mxu0 %v1035_v2 }
  0x21   :  { %550 = vmatpush.bf16.msra.mxu1 %v1006_v7  ;;  %v1018_v16 = vor.u32 %v1094_v13, %v1015_v14  ;;  %564 = vmatpush.bf16.msra.mxu2 %v1010_v11  ;;  %v974_v21 = vor.u32 %v1089_v18, %v973_v17  ;;  %v981_v23 = vld [vmem:[#allocation8 + $0x188] sm:$0xf]  ;;  %v978_v25 = vor.u32 %v1085_v19, %v975_v22  ;;  %v1086_v27 = vld [vmem:[#allocation8 + $0x18c] sm:$0xf]  ;;  %v941_v29 = vld [vmem:[#allocation8 + $0x140] sm:$0xf] }
  0x22   :  { %v1090_v24 = vld [vmem:[#allocation8 + $0x1a4] sm:$0xf0]  ;;  %578 = vmatpush.bf16.msra.mxu3 %v1014_v15  ;;  %v983_v28 = vld [vmem:[#allocation8 + $0x1a8] sm:$0xf0]  ;;  %v1081_v31 = vld [vmem:[#allocation8 + $0x15c] sm:$0xf0] }
  0x23   :  { %v982_v26 = vor.u32 %v1090_v24, %v981_v23  ;;  %v986_v30 = vor.u32 %v1086_v27, %v983_v28  ;;  %v1077_v32 = vld [vmem:[#allocation8 + $0x144] sm:$0xf]  ;;  %v942_v34 = vor.u32 %v1081_v31, %v941_v29  ;;  %v949_v35 = vld [vmem:[#allocation8 + $0x148] sm:$0xf]  ;;  %v1078_v37 = vld [vmem:[#allocation8 + $0x14c] sm:$0xf]  ;;  %778 = vmatmul.msk.bf16.vlgmr.msra.gmra.mxu0 %vm127_vm0, %v106_v20 }
  0x24   :  { %592 = vmatpush.bf16.msrb.mxu0 %v1018_v16  ;;  %v943_v33 = vld [vmem:[#allocation8 + $0x160] sm:$0xf0]  ;;  %v1082_v36 = vld [vmem:[#allocation8 + $0x164] sm:$0xf0]  ;;  %v951_v39 = vld [vmem:[#allocation8 + $0x168] sm:$0xf0] }
  0x25   :  { %551 = vmatpush.bf16.msra.mxu1 %v974_v21  ;;  %565 = vmatpush.bf16.msra.mxu2 %v978_v25  ;;  %v946_v38 = vor.u32 %v1077_v32, %v943_v33  ;;  %v909_v40 = vld [vmem:[#allocation8 + $0x100] sm:$0xf]  ;;  %v950_v42 = vor.u32 %v1082_v36, %v949_v35  ;;  %v1069_v43 = vld [vmem:[#allocation8 + $0x104] sm:$0xf]  ;;  %v954_v45 = vor.u32 %v1078_v37, %v951_v39  ;;  %v917_v46 = vld [vmem:[#allocation8 + $0x108] sm:$0xf] }
  0x26   :  { %v1073_v41 = vld [vmem:[#allocation8 + $0x11c] sm:$0xf0]  ;;  %579 = vmatpush.bf16.msra.mxu3 %v982_v26  ;;  %v911_v44 = vld [vmem:[#allocation8 + $0x120] sm:$0xf0]  ;;  %v1074_v47 = vld [vmem:[#allocation8 + $0x124] sm:$0xf0] }
  0x27   :  { %v910_v48 = vor.u32 %v1073_v41, %v909_v40  ;;  %v1070_v49 = vld [vmem:[#allocation8 + $0x10c] sm:$0xf]  ;;  %v914_v51 = vor.u32 %v1069_v43, %v911_v44  ;;  %v877_v52 = vld [vmem:[#allocation8 + $0xc0] sm:$0xf]  ;;  %v918_v54 = vor.u32 %v1074_v47, %v917_v46  ;;  %v1061_v55 = vld [vmem:[#allocation8 + $0xc4] sm:$0xf] }
  0x28   :  { %593 = vmatpush.bf16.msrb.mxu0 %v986_v30  ;;  %v919_v50 = vld [vmem:[#allocation8 + $0x128] sm:$0xf0]  ;;  %v1065_v53 = vld [vmem:[#allocation8 + $0xdc] sm:$0xf0]  ;;  %v879_v56 = vld [vmem:[#allocation8 + $0xe0] sm:$0xf0] }
  0x29   :  { %552 = vmatpush.bf16.msra.mxu1 %v942_v34  ;;  %566 = vmatpush.bf16.msra.mxu2 %v946_v38  ;;  %v922_v57 = vor.u32 %v1070_v49, %v919_v50  ;;  %v885_v58 = vld [vmem:[#allocation8 + $0xc8] sm:$0xf]  ;;  %v878_v60 = vor.u32 %v1065_v53, %v877_v52  ;;  %v1062_v61 = vld [vmem:[#allocation8 + $0xcc] sm:$0xf]  ;;  %v882_v63 = vor.u32 %v1061_v55, %v879_v56  ;;  %v845_v0 = vld [vmem:[#allocation8 + $0x80] sm:$0xf] }
  0x2a   :  { %580 = vmatpush.bf16.msra.mxu3 %v950_v42  ;;  %v1066_v59 = vld [vmem:[#allocation8 + $0xe4] sm:$0xf0]  ;;  %v887_v62 = vld [vmem:[#allocation8 + $0xe8] sm:$0xf0]  ;;  %v1057_v1 = vld [vmem:[#allocation8 + $0x9c] sm:$0xf0] }
  0x2b   :  { %v886_v2 = vor.u32 %v1066_v59, %v885_v58  ;;  %v1053_v3 = vld [vmem:[#allocation8 + $0x84] sm:$0xf]  ;;  %v890_v5 = vor.u32 %v1062_v61, %v887_v62  ;;  %v853_v6 = vld [vmem:[#allocation8 + $0x88] sm:$0xf]  ;;  %v846_v8 = vor.u32 %v1057_v1, %v845_v0  ;;  %v1054_v9 = vld [vmem:[#allocation8 + $0x8c] sm:$0xf] }
  0x2c   :  { %594 = vmatpush.bf16.msrb.mxu0 %v954_v45  ;;  %v847_v4 = vld [vmem:[#allocation8 + $0xa0] sm:$0xf0]  ;;  %v1058_v7 = vld [vmem:[#allocation8 + $0xa4] sm:$0xf0]  ;;  %v855_v10 = vld [vmem:[#allocation8 + $0xa8] sm:$0xf0] }
  0x2d   :  { %553 = vmatpush.bf16.msra.mxu1 %v910_v48  ;;  %567 = vmatpush.bf16.msra.mxu2 %v914_v51  ;;  %v850_v11 = vor.u32 %v1053_v3, %v847_v4  ;;  %v813_v12 = vld [vmem:[#allocation8 + $0x40] sm:$0xf]  ;;  %v854_v14 = vor.u32 %v1058_v7, %v853_v6  ;;  %v1045_v15 = vld [vmem:[#allocation8 + $0x44] sm:$0xf]  ;;  %v858_v17 = vor.u32 %v1054_v9, %v855_v10  ;;  %v821_v18 = vld [vmem:[#allocation8 + $0x48] sm:$0xf] }
  0x2e   :  { %581 = vmatpush.bf16.msra.mxu3 %v918_v54  ;;  %v1049_v13 = vld [vmem:[#allocation8 + $0x5c] sm:$0xf0]  ;;  %v815_v16 = vld [vmem:[#allocation8 + $0x60] sm:$0xf0]  ;;  %v1050_v19 = vld [vmem:[#allocation8 + $0x64] sm:$0xf0] }
  0x2f   :  { %v814_v20 = vor.u32 %v1049_v13, %v813_v12  ;;  %v1046_v21 = vld [vmem:[#allocation8 + $0x4c] sm:$0xf]  ;;  %v818_v23 = vor.u32 %v1045_v15, %v815_v16  ;;  %v781_v24 = vld [vmem:[#allocation8] sm:$0xf]  ;;  %v822_v26 = vor.u32 %v1050_v19, %v821_v18  ;;  %v1037_v27 = vld [vmem:[#allocation8 + $0x4] sm:$0xf] }
  0x30   :  { %595 = vmatpush.bf16.msrb.mxu0 %v922_v57  ;;  %v823_v22 = vld [vmem:[#allocation8 + $0x68] sm:$0xf0]  ;;  %v1041_v25 = vld [vmem:[#allocation8 + $0x1c] sm:$0xf0]  ;;  %v783_v28 = vld [vmem:[#allocation8 + $0x20] sm:$0xf0] }
  0x31   :  { %554 = vmatpush.bf16.msra.mxu1 %v878_v60  ;;  %568 = vmatpush.bf16.msra.mxu2 %v882_v63  ;;  %v826_v29 = vor.u32 %v1046_v21, %v823_v22  ;;  %v789_v30 = vld [vmem:[#allocation8 + $0x8] sm:$0xf]  ;;  %v782_v32 = vor.u32 %v1041_v25, %v781_v24  ;;  %v1038_v33 = vld [vmem:[#allocation8 + $0xc] sm:$0xf]  ;;  %v786_v35 = vor.u32 %v1037_v27, %v783_v28  ;;  %v1021_v38 = vld [vmem:[#allocation8 + $0x1d0] sm:$0xf] }
  0x32   :  { %582 = vmatpush.bf16.msra.mxu3 %v886_v2  ;;  %v1042_v31 = vld [vmem:[#allocation8 + $0x24] sm:$0xf0]  ;;  %v791_v34 = vld [vmem:[#allocation8 + $0x28] sm:$0xf0]  ;;  %v1099_v39 = vld [vmem:[#allocation8 + $0x1ec] sm:$0xf0] }
  0x33   :  { %v790_v36 = vor.u32 %v1042_v31, %v789_v30  ;;  %v794_v37 = vor.u32 %v1038_v33, %v791_v34  ;;  %v1095_v40 = vld [vmem:[#allocation8 + $0x1d4] sm:$0xf]  ;;  %v1022_v41 = vor.u32 %v1099_v39, %v1021_v38  ;;  %v1029_v43 = vld [vmem:[#allocation8 + $0x1d8] sm:$0xf]  ;;  %v1096_v47 = vld [vmem:[#allocation8 + $0x1dc] sm:$0xf] }
  0x34   :  { %596 = vmatpush.bf16.msrb.mxu0 %v890_v5  ;;  %v1023_v42 = vld [vmem:[#allocation8 + $0x1f0] sm:$0xf0]  ;;  %v1100_v44 = vld [vmem:[#allocation8 + $0x1f4] sm:$0xf0]  ;;  %v1031_v48 = vld [vmem:[#allocation8 + $0x1f8] sm:$0xf0] }
  0x35   :  { %555 = vmatpush.bf16.msra.mxu1 %v846_v8  ;;  %569 = vmatpush.bf16.msra.mxu2 %v850_v11  ;;  %v1026_v45 = vor.u32 %v1095_v40, %v1023_v42  ;;  %v1030_v46 = vor.u32 %v1100_v44, %v1029_v43  ;;  %v1034_v49 = vor.u32 %v1096_v47, %v1031_v48  ;;  %v989_v50 = vld [vmem:[#allocation8 + $0x190] sm:$0xf]  ;;  %v1087_v52 = vld [vmem:[#allocation8 + $0x194] sm:$0xf]  ;;  %v997_v55 = vld [vmem:[#allocation8 + $0x198] sm:$0xf] }
  0x36   :  { %583 = vmatpush.bf16.msra.mxu3 %v854_v14  ;;  %v1091_v51 = vld [vmem:[#allocation8 + $0x1ac] sm:$0xf0]  ;;  %v991_v54 = vld [vmem:[#allocation8 + $0x1b0] sm:$0xf0]  ;;  %v1092_v56 = vld [vmem:[#allocation8 + $0x1b4] sm:$0xf0] }
  0x37   :  { %v990_v53 = vor.u32 %v1091_v51, %v989_v50  ;;  %v994_v57 = vor.u32 %v1087_v52, %v991_v54  ;;  %v998_v58 = vor.u32 %v1092_v56, %v997_v55  ;;  %v1088_v59 = vld [vmem:[#allocation8 + $0x19c] sm:$0xf]  ;;  %v957_v62 = vld [vmem:[#allocation8 + $0x150] sm:$0xf]  ;;  %v1079_v0 = vld [vmem:[#allocation8 + $0x154] sm:$0xf] }
  0x38   :  { %597 = vmatpush.bf16.msrb.mxu0 %v858_v17  ;;  %v999_v60 = vld [vmem:[#allocation8 + $0x1b8] sm:$0xf0]  ;;  %v1083_v63 = vld [vmem:[#allocation8 + $0x16c] sm:$0xf0]  ;;  %v959_v2 = vld [vmem:[#allocation8 + $0x170] sm:$0xf0] }
  0x39   :  { %556 = vmatpush.bf16.msra.mxu1 %v814_v20  ;;  %570 = vmatpush.bf16.msra.mxu2 %v818_v23  ;;  %v1002_v61 = vor.u32 %v1088_v59, %v999_v60  ;;  %v958_v1 = vor.u32 %v1083_v63, %v957_v62  ;;  %v965_v3 = vld [vmem:[#allocation8 + $0x158] sm:$0xf]  ;;  %v962_v5 = vor.u32 %v1079_v0, %v959_v2  ;;  %v1080_v7 = vld [vmem:[#allocation8 + $0x15c] sm:$0xf]  ;;  %v925_v10 = vld [vmem:[#allocation8 + $0x110] sm:$0xf] }
  0x3a   :  { %584 = vmatpush.bf16.msra.mxu3 %v822_v26  ;;  %v1084_v4 = vld [vmem:[#allocation8 + $0x174] sm:$0xf0]  ;;  %v967_v8 = vld [vmem:[#allocation8 + $0x178] sm:$0xf0]  ;;  %v1075_v11 = vld [vmem:[#allocation8 + $0x12c] sm:$0xf0] }
  0x3b   :  { %v966_v6 = vor.u32 %v1084_v4, %v965_v3  ;;  %v970_v9 = vor.u32 %v1080_v7, %v967_v8  ;;  %v1071_v12 = vld [vmem:[#allocation8 + $0x114] sm:$0xf]  ;;  %v926_v13 = vor.u32 %v1075_v11, %v925_v10  ;;  %v933_v15 = vld [vmem:[#allocation8 + $0x118] sm:$0xf]  ;;  %v1072_v19 = vld [vmem:[#allocation8 + $0x11c] sm:$0xf] }
  0x3c   :  { %598 = vmatpush.bf16.msrb.mxu0 %v826_v29  ;;  %v927_v14 = vld [vmem:[#allocation8 + $0x130] sm:$0xf0]  ;;  %v1076_v16 = vld [vmem:[#allocation8 + $0x134] sm:$0xf0]  ;;  %v935_v20 = vld [vmem:[#allocation8 + $0x138] sm:$0xf0] }
  0x3d   :  { %557 = vmatpush.bf16.msra.mxu1 %v782_v32  ;;  %571 = vmatpush.bf16.msra.mxu2 %v786_v35  ;;  %v930_v17 = vor.u32 %v1071_v12, %v927_v14  ;;  %v934_v18 = vor.u32 %v1076_v16, %v933_v15  ;;  %v938_v21 = vor.u32 %v1072_v19, %v935_v20  ;;  %v893_v22 = vld [vmem:[#allocation8 + $0xd0] sm:$0xf]  ;;  %v1063_v24 = vld [vmem:[#allocation8 + $0xd4] sm:$0xf]  ;;  %v901_v27 = vld [vmem:[#allocation8 + $0xd8] sm:$0xf] }
  0x3e   :  { %585 = vmatpush.bf16.msra.mxu3 %v790_v36  ;;  %v1067_v23 = vld [vmem:[#allocation8 + $0xec] sm:$0xf0]  ;;  %v895_v26 = vld [vmem:[#allocation8 + $0xf0] sm:$0xf0]  ;;  %v1068_v28 = vld [vmem:[#allocation8 + $0xf4] sm:$0xf0] }
  0x3f   :  { %v894_v25 = vor.u32 %v1067_v23, %v893_v22  ;;  %v898_v29 = vor.u32 %v1063_v24, %v895_v26  ;;  %v902_v30 = vor.u32 %v1068_v28, %v901_v27  ;;  %v1064_v31 = vld [vmem:[#allocation8 + $0xdc] sm:$0xf]  ;;  %v861_v33 = vld [vmem:[#allocation8 + $0x90] sm:$0xf]  ;;  %v1055_v36 = vld [vmem:[#allocation8 + $0x94] sm:$0xf] }
  0x40   :  { %599 = vmatpush.bf16.msrb.mxu0 %v794_v37  ;;  %v903_v32 = vld [vmem:[#allocation8 + $0xf8] sm:$0xf0]  ;;  %v1059_v35 = vld [vmem:[#allocation8 + $0xac] sm:$0xf0]  ;;  %v863_v37 = vld [vmem:[#allocation8 + $0xb0] sm:$0xf0] }
  0x41   :  { %606 = vmatpush.bf16.msrb.mxu1 %v1022_v41  ;;  %620 = vmatpush.bf16.msrb.mxu2 %v1026_v45  ;;  %v906_v34 = vor.u32 %v1064_v31, %v903_v32  ;;  %v862_v38 = vor.u32 %v1059_v35, %v861_v33  ;;  %v866_v39 = vor.u32 %v1055_v36, %v863_v37  ;;  %v869_v40 = vld [vmem:[#allocation8 + $0x98] sm:$0xf]  ;;  %v1056_v42 = vld [vmem:[#allocation8 + $0x9c] sm:$0xf]  ;;  %v829_v45 = vld [vmem:[#allocation8 + $0x50] sm:$0xf] }
  0x42   :  { %634 = vmatpush.bf16.msrb.mxu3 %v1030_v46  ;;  %v1060_v41 = vld [vmem:[#allocation8 + $0xb4] sm:$0xf0]  ;;  %v871_v44 = vld [vmem:[#allocation8 + $0xb8] sm:$0xf0]  ;;  %v1051_v46 = vld [vmem:[#allocation8 + $0x6c] sm:$0xf0] }
  0x43   :  { %v870_v43 = vor.u32 %v1060_v41, %v869_v40  ;;  %v874_v47 = vor.u32 %v1056_v42, %v871_v44  ;;  %v1047_v48 = vld [vmem:[#allocation8 + $0x54] sm:$0xf]  ;;  %v837_v50 = vld [vmem:[#allocation8 + $0x58] sm:$0xf]  ;;  %v830_v51 = vor.u32 %v1051_v46, %v829_v45  ;;  %v839_v54 = vld [vmem:[#allocation8 + $0x78] sm:$0xf0] }
  0x44   :  { %648 = vmatpush.bf16.msra.mxu0 %v1034_v49  ;;  %v831_v49 = vld [vmem:[#allocation8 + $0x70] sm:$0xf0]  ;;  %v1052_v52 = vld [vmem:[#allocation8 + $0x74] sm:$0xf0]  ;;  %v1040_v0 = vld [vmem:[#allocation8 + $0x1c] sm:$0xf] }
  0x45   :  { %607 = vmatpush.bf16.msrb.mxu1 %v990_v53  ;;  %621 = vmatpush.bf16.msrb.mxu2 %v994_v57  ;;  %v1048_v53 = vld [vmem:[#allocation8 + $0x5c] sm:$0xf]  ;;  %v834_v55 = vor.u32 %v1047_v48, %v831_v49  ;;  %v838_v56 = vor.u32 %v1052_v52, %v837_v50  ;;  %v797_v57 = vld [vmem:[#allocation8 + $0x10] sm:$0xf]  ;;  %v1039_v59 = vld [vmem:[#allocation8 + $0x14] sm:$0xf] }
  0x46   :  { %635 = vmatpush.bf16.msrb.mxu3 %v998_v58  ;;  %v1043_v58 = vld [vmem:[#allocation8 + $0x2c] sm:$0xf0]  ;;  %v842_v60 = vor.u32 %v1048_v53, %v839_v54  ;;  %v805_v62 = vld [vmem:[#allocation8 + $0x18] sm:$0xf]  ;;  %v730_v7 = vld [vmem:[#allocation2] sm:$0x1] }
  0x47   :  { %v1044_v63 = vld [vmem:[#allocation8 + $0x34] sm:$0xf0]  ;;  %v798_v2 = vor.u32 %v1043_v58, %v797_v57  ;;  %v1279_v8 = vmov 0   ;;  %v1343_v16 = vld [vmem:[#allocation9] sm:$0xff]  ;;  %v1348_v26 = vld [vmem:[#allocation11] sm:$0xff] }
  0x48   :  { %649 = vmatpush.bf16.msra.mxu0 %v1002_v61  ;;  %v799_v61 = vld [vmem:[#allocation8 + $0x30] sm:$0xf0]  ;;  %v806_v4 = vor.u32 %v1044_v63, %v805_v62  ;;  %1114 = vset.pattern.permute.xlu0 %v1279_v8  ;;  %v214_v19 = vperm.slane %v1343_v16, 0  ;;  %v215_v20 = vperm.slane %v1343_v16, 1  ;;  %v216_v24 = vperm.slane %v1343_v16, 2 }
  0x49   :  { %608 = vmatpush.bf16.msrb.mxu1 %v958_v1  ;;  %622 = vmatpush.bf16.msrb.mxu2 %v962_v5  ;;  %v807_v1 = vld [vmem:[#allocation8 + $0x38] sm:$0xf0]  ;;  %v802_v3 = vor.u32 %v1039_v59, %v799_v61  ;;  %v217_v31 = vperm.slane %v1343_v16, 3  ;;  %v680_v33 = vperm.slane %v1348_v26, 0  ;;  %v218_v36 = vperm.slane %v1343_v16, 4 }
  0x4a   :  { %636 = vmatpush.bf16.msrb.mxu3 %v966_v6  ;;  %v810_v5 = vor.u32 %v1040_v0, %v807_v1  ;;  %733 = vperm.xlu0 %1114, %v730_v7   ;;  %v683_v46 = vperm.slane %v1348_v26, 3  ;;  %v221_v52 = vperm.slane %v1343_v16, 7  ;;  %v219_v54 = vperm.slane %v1343_v16, 5 }
  0x4b   :  { %v220_v59 = vperm.slane %v1343_v16, 6 }
  0x4c   :  { %650 = vmatpush.bf16.msra.mxu0 %v970_v9  ;;  %v1115_v9 = vld [vmem:[%s1368_s2] ss:$0 sm:$0xff]  ;;  %s1280_s2 = smov [#allocation12]  }
  0x4d   :  { %609 = vmatpush.bf16.msrb.mxu1 %v926_v13  ;;  %623 = vmatpush.bf16.msrb.mxu2 %v930_v17  ;;  %s756_s30 = sshll.u32 %s1280_s2, 4  ;;  %s757_s30 = int_to_ptr.vmem [resolvable:$true] %s756_s30 }
  0x4e   :  { %637 = vmatpush.bf16.msrb.mxu3 %v934_v18 }
  0x50   :  { %651 = vmatpush.bf16.msra.mxu0 %v938_v21 }
  0x51   :  { %610 = vmatpush.bf16.msrb.mxu1 %v894_v25  ;;  %624 = vmatpush.bf16.msrb.mxu2 %v898_v29  ;;  %v681_v29 = vperm.slane %v1348_v26, 1 }
  0x52   :  { %638 = vmatpush.bf16.msrb.mxu3 %v902_v30 }
  0x54   :  { %652 = vmatpush.bf16.msra.mxu0 %v906_v34 }
  0x55   :  { %611 = vmatpush.bf16.msrb.mxu1 %v862_v38  ;;  %625 = vmatpush.bf16.msrb.mxu2 %v866_v39  ;;  %v682_v38 = vperm.slane %v1348_v26, 2 }
  0x56   :  { %639 = vmatpush.bf16.msrb.mxu3 %v870_v43 }
  0x58   :  { %653 = vmatpush.bf16.msra.mxu0 %v874_v47 }
  0x59   :  { %612 = vmatpush.bf16.msrb.mxu1 %v830_v51  ;;  %626 = vmatpush.bf16.msrb.mxu2 %v834_v55  ;;  %v684_v51 = vperm.slane %v1348_v26, 4 }
  0x5a   :  { %640 = vmatpush.bf16.msrb.mxu3 %v838_v56 }
  0x5c   :  { %654 = vmatpush.bf16.msra.mxu0 %v842_v60 }
  0x5d   :  { %613 = vmatpush.bf16.msrb.mxu1 %v798_v2  ;;  %627 = vmatpush.bf16.msrb.mxu2 %v802_v3  ;;  %v685_v2 = vperm.slane %v1348_v26, 5 }
  0x5e   :  { %641 = vmatpush.bf16.msrb.mxu3 %v806_v4 }
  0x60   :  { %655 = vmatpush.bf16.msra.mxu0 %v810_v5 }
  0xa0   :  { %v140_v6 = vpop.f32.mrf.mxu0 }
  0xa1   :  { %v141_v10 = vadd.f32 %v1115_v9, %v140_v6 }
  0xa3   :  { %v145_v13 = vmax.f32 %v141_v10, 0.0 }
  0xa8   :  { %v142_v11 = vpop.f32.mrf.mxu0 }
  0xa9   :  { %v143_v12 = vadd.f32 %v1115_v9, %v142_v11  ;;  %v686_v9 = vperm.slane %v1348_v26, 6 }
  0xab   :  { %v146_v14 = vmax.f32 %v143_v12, 0.0 }
  0xad   :  { %v147_v15 = vpack.c.bf16 %v146_v14, %v145_v13 }
  0xaf   :  { %558 = vmatmul.bf16.vlgmr.msra.gmra.mxu1 %v147_v15  ;;  %572 = vmatmul.bf16.vlgmr.msra.gmra.mxu2 %v147_v15 }
  0xb0   :  { %586 = vmatmul.bf16.vlgmr.msra.gmra.mxu3 %v147_v15  ;;  %600 = vmatmul.bf16.vlgmr.msrb.gmra.mxu0 %v147_v15 }
  0xbf   :  { %614 = vmatmul.bf16.vlgmr.msrb.gmra.mxu1 %v147_v15  ;;  %628 = vmatmul.bf16.vlgmr.msrb.gmra.mxu2 %v147_v15 }
  0xc0   :  { %642 = vmatmul.bf16.vlgmr.msrb.gmra.mxu3 %v147_v15  ;;  %656 = vmatmul.bf16.vlgmr.msra.gmra.mxu0 %v147_v15 }
 0x12c   :  { %v559_v17 = vpop.f32.mrf.mxu1 }
 0x12d   :  { %v601_v18 = vpop.f32.mrf.mxu0  ;;  %v560_v22 = vadd.f32 %v559_v17, %v214_v19  ;;  %v687_v17 = vperm.slane %v1348_v26, 7 }
 0x12e   :  { %v602_v37 = vadd.f32 %v601_v18, %v217_v31 }
 0x12f   :  { %v662_v32 = vmax.f32 %v560_v22, 0.0 }
 0x130   :  { %v665_v50 = vmax.f32 %v602_v37, 0.0 }
 0x131   :  { %v696_v40 = vmul.f32 %v680_v33, %v662_v32 }
 0x132   :  { %v573_v21 = vpop.f32.mrf.mxu2  ;;  %v699_v62 = vmul.f32 %v683_v46, %v665_v50 }
 0x133   :  { %v574_v23 = vadd.f32 %v573_v21, %v215_v20  ;;  %v587_v25 = vpop.f32.mrf.mxu3 }
 0x134   :  { %v561_v27 = vpop.f32.mrf.mxu1  ;;  %v588_v34 = vadd.f32 %v587_v25, %v216_v24 }
 0x135   :  { %v663_v28 = vmax.f32 %v574_v23, 0.0  ;;  %v603_v30 = vpop.f32.mrf.mxu0  ;;  %v562_v42 = vadd.f32 %v561_v27, %v214_v19 }
 0x136   :  { %v664_v41 = vmax.f32 %v588_v34, 0.0  ;;  %v604_v63 = vadd.f32 %v603_v30, %v217_v31 }
 0x137   :  { %v697_v35 = vmul.f32 %v681_v29, %v663_v28  ;;  %v670_v56 = vmax.f32 %v562_v42, 0.0 }
 0x138   :  { %v698_v55 = vmul.f32 %v682_v38, %v664_v41  ;;  %v673_v15 = vmax.f32 %v604_v63, 0.0 }
 0x139   :  { %v712_v47 = vadd.f32 %v697_v35, %v696_v40  ;;  %v704_v3 = vmul.f32 %v680_v33, %v670_v56 }
 0x13a   :  { %v575_v39 = vpop.f32.mrf.mxu2  ;;  %v707_v28 = vmul.f32 %v683_v46, %v673_v15 }
 0x13b   :  { %v576_v43 = vadd.f32 %v575_v39, %v215_v20  ;;  %v589_v44 = vpop.f32.mrf.mxu3  ;;  %v713_v60 = vadd.f32 %v712_v47, %v698_v55 }
 0x13c   :  { %v615_v45 = vpop.f32.mrf.mxu1  ;;  %v590_v57 = vadd.f32 %v589_v44, %v216_v24 }
 0x13d   :  { %v671_v48 = vmax.f32 %v576_v43, 0.0  ;;  %v616_v49 = vadd.f32 %v615_v45, %v218_v36  ;;  %v657_v53 = vpop.f32.mrf.mxu0  ;;  %v714_v12 = vadd.f32 %v713_v60, %v699_v62 }
 0x13e   :  { %v658_v0 = vadd.f32 %v657_v53, %v221_v52  ;;  %v672_v4 = vmax.f32 %v590_v57, 0.0 }
 0x13f   :  { %v666_v58 = vmax.f32 %v616_v49, 0.0  ;;  %v705_v61 = vmul.f32 %v681_v29, %v671_v48  ;;  %v734_v48 = vpop.permute.xlu0 %733  ;;  %v741_v49 = vlaneseq }
 0x140   :  { %v669_v16 = vmax.f32 %v658_v0, 0.0  ;;  %v706_v19 = vmul.f32 %v682_v38, %v672_v4 }
 0x141   :  { %v700_v5 = vmul.f32 %v684_v51, %v666_v58  ;;  %v721_v11 = vadd.f32 %v705_v61, %v704_v3 }
 0x142   :  { %v629_v1 = vpop.f32.mrf.mxu2  ;;  %v703_v29 = vmul.f32 %v687_v17, %v669_v16 }
 0x143   :  { %v630_v6 = vadd.f32 %v629_v1, %v219_v54  ;;  %v643_v7 = vpop.f32.mrf.mxu3  ;;  %v715_v20 = vadd.f32 %v714_v12, %v700_v5  ;;  %v722_v24 = vadd.f32 %v721_v11, %v706_v19 }
 0x144   :  { %v644_v8 = vadd.f32 %v643_v7, %v220_v59  ;;  %v617_v10 = vpop.f32.mrf.mxu1 }
 0x145   :  { %v667_v13 = vmax.f32 %v630_v6, 0.0  ;;  %v618_v14 = vadd.f32 %v617_v10, %v218_v36  ;;  %v659_v23 = vpop.f32.mrf.mxu0  ;;  %v723_v37 = vadd.f32 %v722_v24, %v707_v28 }
 0x146   :  { %v668_v18 = vmax.f32 %v644_v8, 0.0  ;;  %v660_v32 = vadd.f32 %v659_v23, %v221_v52  ;;  %v742_v52 = vand.u32 127, %v741_v49 }
 0x147   :  { %v701_v21 = vmul.f32 %v685_v2, %v667_v13  ;;  %v674_v22 = vmax.f32 %v618_v14, 0.0 }
 0x148   :  { %v702_v27 = vmul.f32 %v686_v9, %v668_v18  ;;  %v677_v41 = vmax.f32 %v660_v32, 0.0 }
 0x149   :  { %v716_v25 = vadd.f32 %v715_v20, %v701_v21  ;;  %v708_v31 = vmul.f32 %v684_v51, %v674_v22  ;;  %v736_v51 = vperm.slane %v734_v48, 0 }
 0x14a   :  { %v631_v30 = vpop.f32.mrf.mxu2  ;;  %v711_v45 = vmul.f32 %v687_v17, %v677_v41 }
 0x14b   :  { %v632_v33 = vadd.f32 %v631_v30, %v219_v54  ;;  %v645_v34 = vpop.f32.mrf.mxu3  ;;  %v717_v35 = vadd.f32 %v716_v25, %v702_v27  ;;  %v724_v40 = vadd.f32 %v723_v37, %v708_v31  ;;  %v744_v54 = vadd.s32 4294967288, %v742_v52 }
 0x14c   :  { %v646_v36 = vadd.f32 %v645_v34, %v220_v59 }
 0x14d   :  { %v675_v26 = vmax.f32 %v632_v33, 0.0  ;;  %v718_v39 = vadd.f32 %v717_v35, %v703_v29 }
 0x14e   :  { %v676_v38 = vmax.f32 %v646_v36, 0.0 }
 0x14f   :  { %v709_v42 = vmul.f32 %v685_v2, %v675_v26  ;;  %719 = vadd.xlane.f32.xlu0 %v718_v39 }
 0x150   :  { %v710_v43 = vmul.f32 %v686_v9, %v676_v38 }
 0x151   :  { %v725_v44 = vadd.f32 %v724_v40, %v709_v42 }
 0x153   :  { %v726_v46 = vadd.f32 %v725_v44, %v710_v43 }
 0x155   :  { %v727_v47 = vadd.f32 %v726_v46, %v711_v45 }
 0x157   :  { %728 = vadd.xlane.f32.xlu1 %v727_v47 }
 0x1c2   :  { %v720_v50 = vpop.xlane.xlu0 %719 }
 0x1c3   :  { %v737_v53 = vadd.f32 %v736_v51, %v720_v50 }
 0x1c5   :  { %v743_v57 = vperm.slane %v737_v53, %v742_v52 }
 0x1ca   :  { %v729_v55 = vpop.xlane.xlu1 %728 }
 0x1cb   :  { %v738_v56 = vadd.f32 %v736_v51, %v729_v55 }
 0x1cd   :  { %v745_v58 = vperm.slane %v738_v56, %v744_v54 }
 0x1cf   :  { %v747_v59 = vsel %vm746_vm1, %v745_v58, %v743_v57 }
 0x1d0   :  { %750 = vst.msk [vmem:[#allocation12] sm:$0x1] %vm749_vm2, %v747_v59 }
 0x1d1   :  { %761 = dma.vmem_to_hbm [thread:$0]  %s757_s30, 16, %s759_s10, [#allocation5]  }
 0x1d2   :  { %1266 = dma.done.wait [#allocation5], 16  }
 0x1d3   :  { %1267 = vsyncadd [#allocation5], 4294967280 }
 0x1d4   :  { %766 = vsyncpa [#allocation4], 1 }
 0x1d5   :  { %767 = vsyncpa [#allocation7], 1 }
 0x1d6   :  { %768 = vsyncpa [#allocation10], 1 }
 0x1d7   :  { %769 = vsyncpa [#allocation5], 1 }

</bundles_post_ra>
